<compile_context>
chip_gen: v7x
topology: tpu7x:2x2x1
jax: 0.10.0
libtpu: 0.0.40
codegen_flags: <defaults>
</compile_context>

<pallas_src>
import functools

import jax
import jax.numpy as jnp
from jax.experimental import pallas as pl
from jax.experimental.pallas import tpu as pltpu


def channel_attention_kernel(x_ref, w1_ref, w2_ref, o_ref, sum_acc, max_acc,
                             *, hw_true, thw, lane, needs_mask):
    # x_ref : (1, C, thw)     w1_ref : (C, C_hid)     w2_ref : (C_hid, C)
    # o_ref : (1, 1, C)       sum_acc/max_acc : (1, C, lane) f32 scratch
    s = pl.program_id(1)
    n_s = pl.num_programs(1)

    # ---- init running accumulators at the first spatial tile ---------------
    @pl.when(s == 0)
    def _init():
        sum_acc[...] = jnp.zeros_like(sum_acc)
        max_acc[...] = jnp.full_like(max_acc, -jnp.inf)

    # ---- steady state: pure VPU accumulate (hides under the x DMA) ---------
    x = x_ref[...].astype(jnp.float32)                     # (1, C, thw)
    for j in range(thw // lane):                           # static, unrolled
        chunk = x[:, :, j * lane:(j + 1) * lane]           # vreg-aligned slice
        sum_acc[...] += chunk                              # zero pad is harmless for sum
        if needs_mask:
            lane_ids = jax.lax.broadcasted_iota(jnp.int32, chunk.shape, 2)
            gidx = s * thw + j * lane + lane_ids
            chunk = jnp.where(gidx < hw_true, chunk, -jnp.inf)
        max_acc[...] = jnp.maximum(max_acc[...], chunk)

    # ---- finalize once: one cross-lane reduce + tiny FC + sigmoid ----------
    @pl.when(s == n_s - 1)
    def _finalize():
        avg_pool = jnp.sum(sum_acc[...], axis=-1) * (1.0 / hw_true)    # (1, C)
        max_pool = jnp.max(max_acc[...], axis=-1)                      # (1, C)
        p = jnp.concatenate([avg_pool, max_pool], axis=0)              # (2, C)
        w1 = w1_ref[...].astype(jnp.float32)                           # (C, C_hid)
        w2 = w2_ref[...].astype(jnp.float32)                           # (C_hid, C)
        # Shared fc() applied to both pooled vectors in one fused matmul pair.
        h = jnp.maximum(jnp.dot(p, w1, preferred_element_type=jnp.float32), 0.0)
        y = jnp.dot(h, w2, preferred_element_type=jnp.float32)         # (2, C)
        out = jax.nn.sigmoid(y[0:1] + y[1:2])                          # (1, C)
        o_ref[...] = out.reshape(o_ref.shape).astype(o_ref.dtype)


def _round_up(x, m):
    return (x + m - 1) // m * m


def _default_tile_bytes():
    # Size the single-buffer spatial tile from the device's physical VMEM so
    # double-buffering fits on every generation (v7x: 64 MiB; v5e/v6e: 128 MiB).
    try:
        vmem = pltpu.get_tpu_info().vmem_capacity_bytes
    except Exception:
        vmem = 64 << 20
    return max(1 << 20, min(8 << 20, vmem // 16))


def channel_attention(x, w1, w2, *, tile_bytes=None):
    """x: (B, C, H, W) NCHW. w1: (C_hid, C), w2: (C, C_hid) 1x1-conv weights.
    Returns (B, C, 1, 1), matching the PyTorch module's forward."""
    B, C, H, W = x.shape
    HW = H * W
    C_hid = w1.shape[0]
    lane = 128

    if tile_bytes is None:
        tile_bytes = _default_tile_bytes()

    # Pre-transpose weights once in the wrapper -> no in-kernel transposes.
    w1_t = jnp.transpose(w1).astype(jnp.float32)   # (C, C_hid)
    w2_t = jnp.transpose(w2).astype(jnp.float32)   # (C_hid, C)

    itemsize = jnp.dtype(x.dtype).itemsize
    max_lanes = max(lane, (tile_bytes // max(1, C * itemsize)) // lane * lane)
    thw = min(_round_up(HW, lane), max_lanes)      # spatial tile (multiple of 128)
    hw_pad = _round_up(HW, thw)
    n_hw = hw_pad // thw
    needs_mask = hw_pad != HW

    # Keep x in its HBM dtype (bf16-friendly); only reshape/pad.
    x3 = x.reshape(B, C, HW)
    if needs_mask:
        x3 = jnp.pad(x3, ((0, 0), (0, 0), (0, hw_pad - HW)))

    kernel = functools.partial(
        channel_attention_kernel,
        hw_true=HW, thw=thw, lane=lane, needs_mask=needs_mask)

    block_bytes = C * thw * itemsize
    vmem_limit = int(min(100 << 20, max(16 << 20, 4 * block_bytes + (4 << 20))))

    cost = pl.CostEstimate(
        flops=2 * B * C * hw_pad + 4 * (2 * B) * C * C_hid,
        transcendentals=B * C,
        bytes_accessed=B * C * hw_pad * itemsize + 2 * C * C_hid * 4 + B * C * 4,
    )

    out = pl.pallas_call(
        kernel,
        out_shape=jax.ShapeDtypeStruct((B, 1, C), jnp.float32),
        grid_spec=pltpu.PrefetchScalarGridSpec(
            num_scalar_prefetch=0,
            grid=(B, n_hw),
            in_specs=[
                pl.BlockSpec((1, C, thw), lambda b, s: (b, 0, s)),
                pl.BlockSpec((C, C_hid), lambda b, s: (0, 0)),
                pl.BlockSpec((C_hid, C), lambda b, s: (0, 0)),
            ],
            out_specs=pl.BlockSpec((1, 1, C), lambda b, s: (b, 0, 0)),
            scratch_shapes=[
                pltpu.VMEM((1, C, lane), jnp.float32),   # running sum
                pltpu.VMEM((1, C, lane), jnp.float32),   # running max
            ],
        ),
        compiler_params=pltpu.CompilerParams(
            dimension_semantics=("parallel", "arbitrary"),
            vmem_limit_bytes=vmem_limit,
        ),
        cost_estimate=cost,
    )(x3, w1_t, w2_t)

    return out.reshape(B, C, 1, 1)


def reference(x, w1, w2):
    # Pure-JAX reference of the PyTorch forward.
    avg = jnp.mean(x, axis=(2, 3))                      # (B, C)
    mx = jnp.max(x, axis=(2, 3))                        # (B, C)

    def fc(p):
        h = jnp.maximum(p @ w1.T, 0.0)
        return h @ w2.T

    return jax.nn.sigmoid(fc(avg) + fc(mx))[:, :, None, None]


if __name__ == "__main__":
    # in_planes must be >= 16 (module hardcodes in_planes // 16 for the bottleneck).
    B, C, H, W = 2, 32, 16, 16
    C_hid = C // 16

    key = jax.random.PRNGKey(0)
    kx, k1, k2 = jax.random.split(key, 3)

    x = jax.random.normal(kx, (B, C, H, W), dtype=jnp.float32)
    # Deterministic "Kaiming-ish" init for the two 1x1 conv weights (no bias).
    w1 = jax.random.normal(k1, (C_hid, C), dtype=jnp.float32) * (1.0 / jnp.sqrt(C))
    w2 = jax.random.normal(k2, (C, C_hid), dtype=jnp.float32) * (1.0 / jnp.sqrt(C_hid))

    out = channel_attention(x, w1, w2)
    out = jax.block_until_ready(out)

    ref = reference(x, w1, w2)
    assert out.shape == (B, C, 1, 1), out.shape
    assert jnp.allclose(out, ref, atol=1e-5, rtol=1e-5), float(jnp.max(jnp.abs(out - ref)))

    print("KERNEL_OK")
</pallas_src>

<mosaic_0001>
module attributes {stable_mosaic.version = 11 : i64} {
  func.func @channel_attention_kernel(%arg0: i32, %arg1: i32, %arg2: memref<1x32x256xf32, #tpu.memory_space<vmem>>, %arg3: memref<32x2xf32, #tpu.memory_space<vmem>>, %arg4: memref<2x32xf32, #tpu.memory_space<vmem>>, %arg5: memref<1x1x32xf32, #tpu.memory_space<vmem>>, %arg6: memref<1x32x128xf32, #tpu.memory_space<vmem>>, %arg7: memref<1x32x128xf32, #tpu.memory_space<vmem>>) attributes {dimension_semantics = [#tpu.dimension_semantics<parallel>, #tpu.dimension_semantics<arbitrary>], iteration_bounds = array<i64: 2, 1>, scalar_prefetch = 0 : i64, scratch_operands = 2 : i64, tpu.core_type = #tpu.core_type<tc>, window_params = [{transform_indices = @transform_0, window_bounds = array<i64: 1, 32, 256>}, {pipeline_mode = #tpu.pipeline_mode<synchronous>, transform_indices = @transform_1, window_bounds = array<i64: 32, 2>}, {pipeline_mode = #tpu.pipeline_mode<synchronous>, transform_indices = @transform_2, window_bounds = array<i64: 2, 32>}, {transform_indices = @transform_3, window_bounds = array<i64: 1, 1, 32>}]} {
    %c0_i32 = arith.constant 0 : i32
    %0 = arith.cmpi eq, %arg1, %c0_i32 : i32
    %1 = arith.extui %0 : i1 to i32
    %c0_i32_0 = arith.constant 0 : i32
    %2 = arith.cmpi ne, %1, %c0_i32_0 : i32
    scf.if %2 {
      %cst = arith.constant 0.000000e+00 : f32
      %21 = vector.broadcast %cst : f32 to vector<1x32x128xf32>
      %c0_29 = arith.constant 0 : index
      %c0_30 = arith.constant 0 : index
      %c0_31 = arith.constant 0 : index
      %22 = vector.load %arg6[%c0_29, %c0_30, %c0_31] : memref<1x32x128xf32, #tpu.memory_space<vmem>>, vector<1x32x128xf32>
      tpu.vector_store %arg6[%c0_29, %c0_30, %c0_31], %21 {strides = array<i32>} : memref<1x32x128xf32, #tpu.memory_space<vmem>>, vector<1x32x128xf32>,
      %cst_32 = arith.constant 0xFF800000 : f32
      %23 = vector.broadcast %cst_32 : f32 to vector<1x32x128xf32>
      %c0_33 = arith.constant 0 : index
      %c0_34 = arith.constant 0 : index
      %c0_35 = arith.constant 0 : index
      %24 = vector.load %arg7[%c0_33, %c0_34, %c0_35] : memref<1x32x128xf32, #tpu.memory_space<vmem>>, vector<1x32x128xf32>
      tpu.vector_store %arg7[%c0_33, %c0_34, %c0_35], %23 {strides = array<i32>} : memref<1x32x128xf32, #tpu.memory_space<vmem>>, vector<1x32x128xf32>,
    } else {
    }
    %c0 = arith.constant 0 : index
    %c0_1 = arith.constant 0 : index
    %c0_2 = arith.constant 0 : index
    %3 = vector.load %arg2[%c0, %c0_1, %c0_2] : memref<1x32x256xf32, #tpu.memory_space<vmem>>, vector<1x32x256xf32>
    %4 = vector.extract_strided_slice %3 {offsets = [0, 0, 0], sizes = [1, 32, 128], strides = [1, 1, 1]} : vector<1x32x256xf32> to vector<1x32x128xf32>
    %c0_3 = arith.constant 0 : index
    %c0_4 = arith.constant 0 : index
    %c0_5 = arith.constant 0 : index
    %5 = vector.load %arg6[%c0_3, %c0_4, %c0_5] : memref<1x32x128xf32, #tpu.memory_space<vmem>>, vector<1x32x128xf32>
    %6 = arith.addf %5, %4 : vector<1x32x128xf32>
    %c0_6 = arith.constant 0 : index
    %c0_7 = arith.constant 0 : index
    %c0_8 = arith.constant 0 : index
    %7 = vector.load %arg6[%c0_6, %c0_7, %c0_8] : memref<1x32x128xf32, #tpu.memory_space<vmem>>, vector<1x32x128xf32>
    tpu.vector_store %arg6[%c0_6, %c0_7, %c0_8], %6 {strides = array<i32>} : memref<1x32x128xf32, #tpu.memory_space<vmem>>, vector<1x32x128xf32>,
    %c0_9 = arith.constant 0 : index
    %c0_10 = arith.constant 0 : index
    %c0_11 = arith.constant 0 : index
    %8 = vector.load %arg7[%c0_9, %c0_10, %c0_11] : memref<1x32x128xf32, #tpu.memory_space<vmem>>, vector<1x32x128xf32>
    %9 = arith.maximumf %8, %4 : vector<1x32x128xf32>
    %c0_12 = arith.constant 0 : index
    %c0_13 = arith.constant 0 : index
    %c0_14 = arith.constant 0 : index
    %10 = vector.load %arg7[%c0_12, %c0_13, %c0_14] : memref<1x32x128xf32, #tpu.memory_space<vmem>>, vector<1x32x128xf32>
    tpu.vector_store %arg7[%c0_12, %c0_13, %c0_14], %9 {strides = array<i32>} : memref<1x32x128xf32, #tpu.memory_space<vmem>>, vector<1x32x128xf32>,
    %11 = vector.extract_strided_slice %3 {offsets = [0, 0, 128], sizes = [1, 32, 128], strides = [1, 1, 1]} : vector<1x32x256xf32> to vector<1x32x128xf32>
    %c0_15 = arith.constant 0 : index
    %c0_16 = arith.constant 0 : index
    %c0_17 = arith.constant 0 : index
    %12 = vector.load %arg6[%c0_15, %c0_16, %c0_17] : memref<1x32x128xf32, #tpu.memory_space<vmem>>, vector<1x32x128xf32>
    %13 = arith.addf %12, %11 : vector<1x32x128xf32>
    %c0_18 = arith.constant 0 : index
    %c0_19 = arith.constant 0 : index
    %c0_20 = arith.constant 0 : index
    %14 = vector.load %arg6[%c0_18, %c0_19, %c0_20] : memref<1x32x128xf32, #tpu.memory_space<vmem>>, vector<1x32x128xf32>
    tpu.vector_store %arg6[%c0_18, %c0_19, %c0_20], %13 {strides = array<i32>} : memref<1x32x128xf32, #tpu.memory_space<vmem>>, vector<1x32x128xf32>,
    %c0_21 = arith.constant 0 : index
    %c0_22 = arith.constant 0 : index
    %c0_23 = arith.constant 0 : index
    %15 = vector.load %arg7[%c0_21, %c0_22, %c0_23] : memref<1x32x128xf32, #tpu.memory_space<vmem>>, vector<1x32x128xf32>
    %16 = arith.maximumf %15, %11 : vector<1x32x128xf32>
    %c0_24 = arith.constant 0 : index
    %c0_25 = arith.constant 0 : index
    %c0_26 = arith.constant 0 : index
    %17 = vector.load %arg7[%c0_24, %c0_25, %c0_26] : memref<1x32x128xf32, #tpu.memory_space<vmem>>, vector<1x32x128xf32>
    tpu.vector_store %arg7[%c0_24, %c0_25, %c0_26], %16 {strides = array<i32>} : memref<1x32x128xf32, #tpu.memory_space<vmem>>, vector<1x32x128xf32>,
    %c0_i32_27 = arith.constant 0 : i32
    %18 = arith.cmpi eq, %arg1, %c0_i32_27 : i32
    %19 = arith.extui %18 : i1 to i32
    %c0_i32_28 = arith.constant 0 : i32
    %20 = arith.cmpi ne, %19, %c0_i32_28 : i32
    scf.if %20 {
      %c0_29 = arith.constant 0 : index
      %c0_30 = arith.constant 0 : index
      %c0_31 = arith.constant 0 : index
      %21 = vector.load %arg6[%c0_29, %c0_30, %c0_31] : memref<1x32x128xf32, #tpu.memory_space<vmem>>, vector<1x32x128xf32>
      %cst = arith.constant dense<0.000000e+00> : vector<1x32xf32>
      %22 = vector.multi_reduction <add>, %21, %cst [2] : vector<1x32x128xf32> to vector<1x32xf32>
      %cst_32 = arith.constant 3.906250e-03 : f32
      %23 = vector.broadcast %cst_32 : f32 to vector<1x32xf32>
      %24 = arith.mulf %22, %23 : vector<1x32xf32>
      %c0_33 = arith.constant 0 : index
      %c0_34 = arith.constant 0 : index
      %c0_35 = arith.constant 0 : index
      %25 = vector.load %arg7[%c0_33, %c0_34, %c0_35] : memref<1x32x128xf32, #tpu.memory_space<vmem>>, vector<1x32x128xf32>
      %cst_36 = arith.constant dense<0xFF800000> : vector<1x32xf32>
      %26 = vector.multi_reduction <maximumf>, %25, %cst_36 [2] : vector<1x32x128xf32> to vector<1x32xf32>
      %27 = tpu.concatenate %24, %26 in 0 : vector<1x32xf32>, vector<1x32xf32> -> vector<2x32xf32>
      %c0_37 = arith.constant 0 : index
      %c0_38 = arith.constant 0 : index
      %28 = vector.load %arg3[%c0_37, %c0_38] : memref<32x2xf32, #tpu.memory_space<vmem>>, vector<32x2xf32>
      %c0_39 = arith.constant 0 : index
      %c0_40 = arith.constant 0 : index
      %29 = vector.load %arg4[%c0_39, %c0_40] : memref<2x32xf32, #tpu.memory_space<vmem>>, vector<2x32xf32>
      %cst_41 = arith.constant dense<0.000000e+00> : vector<2x2xf32>
      %30 = tpu.matmul %27, %28, %cst_41 {dimension_numbers = #tpu.dot_dimension_numbers<[1], [0], [0], [1], [0, 0, 1, 1], [], []>} : vector<2x32xf32>, vector<32x2xf32>, vector<2x2xf32> -> vector<2x2xf32>
      %cst_42 = arith.constant 0.000000e+00 : f32
      %31 = vector.broadcast %cst_42 : f32 to vector<2x2xf32>
      %32 = arith.maximumf %30, %31 : vector<2x2xf32>
      %cst_43 = arith.constant dense<0.000000e+00> : vector<2x32xf32>
      %33 = tpu.matmul %32, %29, %cst_43 {dimension_numbers = #tpu.dot_dimension_numbers<[1], [0], [0], [1], [0, 0, 1, 1], [], []>} : vector<2x2xf32>, vector<2x32xf32>, vector<2x32xf32> -> vector<2x32xf32>
      %34 = vector.extract_strided_slice %33 {offsets = [0, 0], sizes = [1, 32], strides = [1, 1]} : vector<2x32xf32> to vector<1x32xf32>
      %35 = vector.extract_strided_slice %33 {offsets = [1, 0], sizes = [1, 32], strides = [1, 1]} : vector<2x32xf32> to vector<1x32xf32>
      %36 = arith.addf %34, %35 : vector<1x32xf32>
      %37 = arith.negf %36 : vector<1x32xf32>
      %38 = math.exp %37 : vector<1x32xf32>
      %cst_44 = arith.constant 1.000000e+00 : f32
      %39 = vector.broadcast %cst_44 : f32 to vector<1x32xf32>
      %40 = arith.addf %39, %38 : vector<1x32xf32>
      %41 = arith.divf %39, %40 : vector<1x32xf32>
      %42 = vector.shape_cast %41 : vector<1x32xf32> to vector<1x1x32xf32>
      %c0_45 = arith.constant 0 : index
      %c0_46 = arith.constant 0 : index
      %c0_47 = arith.constant 0 : index
      %43 = vector.load %arg5[%c0_45, %c0_46, %c0_47] : memref<1x1x32xf32, #tpu.memory_space<vmem>>, vector<1x1x32xf32>
      tpu.vector_store %arg5[%c0_45, %c0_46, %c0_47], %42 {strides = array<i32>} : memref<1x1x32xf32, #tpu.memory_space<vmem>>, vector<1x1x32xf32>,
    } else {
    }
    return
  }
  func.func @transform_0(%arg0: i32, %arg1: i32) -> (i32, i32, i32) {
    %c0_i32 = arith.constant 0 : i32
    %c0_i32_0 = arith.constant 0 : i32
    return %arg0, %c0_i32, %arg1 : i32, i32, i32
  }
  func.func @transform_1(%arg0: i32, %arg1: i32) -> (i32, i32) {
    %c0_i32 = arith.constant 0 : i32
    %c0_i32_0 = arith.constant 0 : i32
    %c0_i32_1 = arith.constant 0 : i32
    return %c0_i32, %c0_i32_0 : i32, i32
  }
  func.func @transform_2(%arg0: i32, %arg1: i32) -> (i32, i32) {
    %c0_i32 = arith.constant 0 : i32
    %c0_i32_0 = arith.constant 0 : i32
    %c0_i32_1 = arith.constant 0 : i32
    return %c0_i32, %c0_i32_0 : i32, i32
  }
  func.func @transform_3(%arg0: i32, %arg1: i32) -> (i32, i32, i32) {
    %c0_i32 = arith.constant 0 : i32
    %c0_i32_0 = arith.constant 0 : i32
    %c0_i32_1 = arith.constant 0 : i32
    return %arg0, %c0_i32, %c0_i32_0 : i32, i32, i32
  }
}

</mosaic_0001>

<bundles_post_ra>
// kernel: tpu_custom_call.1
= control target key start
LH: loop header
LB: loop body
LE: loop exit
PB: predicated region body
PF: predicated region fallthrough
CT: control target
= control target key end

     0   :  { %8 = vsyncpa [#allocation5], 0  ;;  %s1071_s0 = inlined_call_operand.hbm [shape: f32[2,32,256], index: 0, kind: input, shape index: {}]   ;;  %s1072_s1 = inlined_call_operand.vmem [shape: f32[32,2], index: 1, kind: input, shape index: {}]   ;;  %s1073_s2 = inlined_call_operand.vmem [shape: f32[2,32], index: 2, kind: input, shape index: {}]   ;;  %s1074_s3 = inlined_call_operand.hbm [shape: f32[2,1,32], index: 3, kind: output, shape index: {}]  }
   0x1   :  { %10 = vsyncpa [#allocation5 + $0x1], 0 }
   0x2   :  { %11 = vsyncpa [#allocation6], 0 }
   0x3   :  { %13 = vsyncpa [#allocation6 + $0x1], 0  ;;  %s880_s12 = smov 0   ;;  %s882_s13 = smov 0  }
   0x4   :  { %s884_s14 = smov 0   ;;  %s886_s15 = smov 0  }
   0x5   :  { %s888_s16 = smov 0   ;;  %s890_s17 = smov 0  }
   0x6 LB: > { %s622_s18 = sadd.s32 4294967295, %s851_s17   ;;  %s623_s19 = sadd.s32 4294967294, %s851_s17   ;;  %s851_s17 = sphi %s890_s17, %s19_s17   ;;  %s847_s16 = sphi %s888_s16, %s1089_s16   ;;  %s843_s15 = sphi %s886_s15, %s1088_s15   ;;  %s839_s14 = sphi %s884_s14, %s1087_s14   ;;  %s835_s13 = sphi %s882_s13, %s1086_s13   ;;  %s831_s12 = sphi %s880_s12, %s1085_s12  }
   0x7   : > { %s31_s20 = sadd.s32 1, %s847_s16  ;;  %s40_s21 = sadd.s32 1, %s839_s14 }
   0x8   : > { %p33_p0 = scmp.ge.s32.totalorder %s31_s20, 2  ;;  %p47_p1 = scmp.ne.s32.totalorder %s839_s14, %s835_s13 }
   0x9   : > { %p48_p2 = scmp.eq.s32.totalorder %s851_s17, 0  ;;  %p53_p3 = scmp.ne.s32.totalorder %s835_s13, %s831_s12 }
   0xa   : > { %s1091_s20 = smov (%p33_p0, %s31_s20), 0  ;;  %p54_p5 = scmp.eq.s32.totalorder %s622_s18, 0 }
   0xb   : > { %p921_p4 = por %p48_p2, %p47_p1  ;;  %s35_s23 = ssub.s32 %s847_s16, %s1091_s20 }
   0xc   : > { %p119_p6 = scmp.eq.s32.totalorder %s622_s18, 1  ;;  %p38_p7 = scmp.eq.s32.totalorder %s35_s23, 0 }
   0xd   : > { %p927_p8 = por %p54_p5, %p53_p3  ;;  %p125_p10 = scmp.eq.s32.totalorder %s623_s19, 1 }
   0xe   : > { %p931_p9 = por %p119_p6, %p47_p1  ;;  %p680_p13 = scmp.lt.s32.totalorder %s851_s17, 2 }
   0xf   : > { %s936_s26 = scalar_select %p38_p7, %s839_s14, %s40_s21  }
  0x10   : > { %s1078_s25 = scalar_select %p931_p9, 1, 0 }
  0x11   : > { %p938_p11 = por %p125_p10, %p53_p3  ;;  %s151_s28 = sand.u32 1, %s839_s14  }
  0x12   : > { %s626_s29 = sshll.u32 %s151_s28, 6  ;;  %s638_s30 = sshll.u32 %s847_s16, 10 }
  0x13   : > { %s1079_s27 = scalar_select %p938_p11, 1, 0 }
  0x14   : > { %s949_s6 = scalar_lea.hbm %s1071_s0, %s638_s30  ;;  %s155_s7 = scalar_lea.vmem [#allocation4], %s626_s29 }
  0x15   : > { %s164_s8 = sshll.u32 %s155_s7, 4  ;;  %p955_p0 = pnand %p680_p13, %p921_p4  ;;  %s951_s8 = int_to_ptr.vmem [resolvable:$true] %s164_s8 }
  0x16   : > { %s960_s10 = scalar_lea.sflag [#allocation5], %s151_s28  ;;  %s739_s11 = scalar_lea.hbm %s949_s6, 1024 }
  0x17   : > { %p740_p2 = scmp.ne.s32.totalorder %s949_s6, %s739_s11  ;;  %p741_p3 = pneg %p955_p0 }
  0x18   : > { %s744_s21 = scalar_lea.hbm %s1071_s0, 2048  ;;  %p745_p4 = scmp.lt.u32.totalorder %s949_s6, %s1071_s0 }
  0x19   : > { %p742_p5 = pnand %p741_p3, %p740_p2  ;;  %p746_p7 = scmp.lt.u32.totalorder %s744_s21, %s739_s11 }
  0x1a   : > { %p748_p13 = scmp.lt.u32.totalorder %s739_s11, %s949_s6 }
  0x1b   : > { %p743_p6 = pneg %p742_p5  ;;  %p747_p10 = por %p746_p7, %p745_p4 }
  0x1d   : > { %p749_p12 = por %p748_p13, %p747_p10 }
  0x1f   : > { %p750_p1 = pnand %p749_p12, %p743_p6 }
  0x21   : > { %753 = shalt.err (!%p750_p1)
}
  0x22   : > { %s754_s28 = scalar_lea.vmem %s951_s8, 1024  ;;  %s853_s29 = smov [#allocation4]  }
  0x23   : > { %p755_p2 = scmp.ne.s32.totalorder %s951_s8, %s754_s28  ;;  %s759_s30 = sshll.u32 %s853_s29, 4  ;;  %s760_s30 = int_to_ptr.vmem [resolvable:$false] %s759_s30 }
  0x24   : > { %s761_s4 = scalar_lea.vmem %s760_s30, 2048  ;;  %p762_p9 = scmp.lt.s32.totalorder %s951_s8, %s760_s30 }
  0x25   : > { %p757_p5 = pnand %p755_p2, %p741_p3  ;;  %p763_p4 = scmp.lt.s32.totalorder %s761_s4, %s754_s28 }
  0x27   : > { %p758_p11 = pneg %p757_p5  ;;  %p764_p7 = por %p763_p4, %p762_p9 }
  0x29   : > { %p765_p10 = pnand %p764_p7, %p758_p11 }
  0x2b   : > { %768 = shalt.err (!%p765_p10)
}
  0x2c   : > { %s854_s5 = smov 256   ;;  %s855_s7 = smov 16  }
  0x2d   : > { %675 = dma.hbm_to_vmem [thread:$0]  (!%p955_p0), %s949_s6, 1024, %s951_s8, %s960_s10, %s854_s5, %s854_s5, %s855_s7  }
  0x2e   : > { %p172_p12 = scmp.lt.s32.totalorder %s851_s17, 3  ;;  %p1081_p1 = scmp.ge.s32.totalorder %s851_s17, 1 }
  0x30   : > { %p173_p3 = pnand %p1081_p1, %p172_p12 }
  0x31   : > { %s992_s11 = sand.u32 (!%p173_p3), 1, %s835_s13  }
  0x32   : > { %176 = sbr.rel (%p173_p3) target bundleno = 691 (0x2b3), region = 32  ;;  %s630_s18 = sshll.u32 (!%p173_p3), %s992_s11, 6 }
  0x33   : > { %s179_s19 = scalar_lea.sflag (!%p173_p3), [#allocation5], %s992_s11  ;;  %s182_s21 = scalar_lea.vmem (!%p173_p3), [#allocation4], %s630_s18 }
  0x39   : > { %822 = dma.done.wait (%p927_p8), %s179_s19, 1024  }
  0x3a   : > { %824 = vsyncadd (%p927_p8), %s179_s19, 4294966272  ;;  %v221_v0 = vld [vmem:[%s182_s21 + $0x20] sm:$0xff]  ;;  %v222_v1 = vld [vmem:[%s182_s21 + $0x28] sm:$0xff]  ;;  %v856_v19 = vmov 0.0|0.0   ;;  %vm857_vm0 = vmmov 0   ;;  %v858_v23 = vmov 0.0   ;;  %v308_v24 = vlaneseq }
  0x3b   : > { %v217_v2 = vld [vmem:[%s182_s21] sm:$0xff]  ;;  %v255_v3 = vadd.f32 %v222_v1, %v221_v0  ;;  %v218_v4 = vld [vmem:[%s182_s21 + $0x8] sm:$0xff]  ;;  %v223_v5 = vld [vmem:[%s182_s21 + $0x30] sm:$0xff]  ;;  %v267_v15 = vmax.f32 %v221_v0, %v222_v1  ;;  %662 = vmatprep.subr.bf16.mxu0 %v856_v19  ;;  %654 = vmatprep.mubr.msk.f32.mxu0 %vm857_vm0, %v858_v23  ;;  %vm319_vm1 = vcmask 130112   ;;  %vm326_vm2 = vcmask 195712   ;;  %s635_s4 = sshll.u32 %s843_s15, 4 }
  0x3c   : > { %v224_v6 = vld [vmem:[%s182_s21 + $0x38] sm:$0xff]  ;;  %v253_v7 = vadd.f32 %v218_v4, %v217_v2  ;;  %v219_v8 = vld [vmem:[%s182_s21 + $0x10] sm:$0xff]  ;;  %v265_v13 = vmax.f32 %v217_v2, %v218_v4  ;;  %v362_v16 = vld [vmem:[%s1072_s1] sm:$0xff]  ;;  %657 = vmatprep.subr.mxu1 %v858_v23  ;;  %659 = vmatprep.mubr.msk.f32.mxu1 %vm857_vm0, %v858_v23  ;;  %v309_v25 = vand.u32 127, %v308_v24  ;;  %v311_v28 = vshrl.u32 %v308_v24, 7  ;;  %s203_s5 = scalar_lea.vmem [#allocation7], %s992_s11 }
  0x3d   : > { %v220_v9 = vld [vmem:[%s182_s21 + $0x18] sm:$0xff]  ;;  %284 = vadd.xlane.f32.xlu1 %v255_v3  ;;  %v256_v10 = vadd.f32 %v224_v6, %v223_v5  ;;  %v268_v14 = vmax.f32 %v223_v5, %v224_v6  ;;  %v363_v17 = vld [vmem:[%s1072_s1 + $0x8] sm:$0xff]  ;;  %v364_v20 = vld [vmem:[%s1072_s1 + $0x10] sm:$0xff]  ;;  %vm333_vm3 = vcmask 261312   ;;  %vm360_vm4 = vcmask 1040384   ;;  %s545_s7 = sshll.u32 %s203_s5, 4  ;;  %s1022_s21 = scalar_lea.hbm %s1074_s3, %s635_s4  ;;  %s1024_s7 = int_to_ptr.vmem [resolvable:$true] %s545_s7 }
  0x3e   : > { %280 = vadd.xlane.f32.xlu0 %v253_v7  ;;  %v254_v11 = vadd.f32 %v220_v9, %v219_v8  ;;  %v266_v12 = vmax.f32 %v219_v8, %v220_v9  ;;  %v663_v18 = vpack.c.bf16 %v363_v17, %v362_v16  ;;  %v365_v21 = vld [vmem:[%s1072_s1 + $0x18] sm:$0xff]  ;;  %v314_v27 = vadd.s32 4294967288, %v309_v25  ;;  %v366_v61 = vld [vmem:[%s1073_s2] sm:$0x3]  ;;  %s533_s24 = scalar_lea.sflag [#allocation6], %s992_s11  ;;  %s769_s6 = scalar_lea.vmem %s1024_s7, 16 }
  0x3f   : > { %v666_v22 = vpack.c.bf16 %v365_v21, %v364_v20  ;;  %v321_v30 = vadd.s32 4294967280, %v309_v25  ;;  %v312_v33 = vsub.s32 %v309_v25, %v311_v28  ;;  %v328_v35 = vadd.s32 4294967272, %v309_v25  ;;  %p770_p8 = scmp.ne.s32.totalorder %s1024_s7, %s769_s6  ;;  %p1082_p9 = scmp.ne.s32.totalorder %s1078_s25, 0 }
  0x40   : > { %664 = vmatpush3.bf16.msra.mxu0 %v663_v18  ;;  %v317_v32 = vsub.s32 %v314_v27, %v311_v28  ;;  %vm367_vm5 = vcmask 261120   ;;  %vm446_vm6 = vcmask 1041408   ;;  %vm442_vm7 = vcmask 15360   ;;  %s859_s15 = smov [#allocation7]  }
  0x41   : > { %286 = vadd.xlane.f32.xlu1 %v256_v10  ;;  %665 = vmatprep.subr.bf16.mxu0 %v856_v19  ;;  %v324_v38 = vsub.s32 %v321_v30, %v311_v28  ;;  %v331_v43 = vsub.s32 %v328_v35, %v311_v28  ;;  %vm530_vm8 = vcmask 253952   ;;  %p771_p11 = pnand %p770_p8, %p1082_p9  ;;  %s773_s8 = sshll.u32 %s859_s15, 4  ;;  %s774_s8 = int_to_ptr.vmem [resolvable:$false] %s773_s8 }
  0x42   : > { %282 = vadd.xlane.f32.xlu0 %v254_v11  ;;  %658 = vmatpush3.msk.msra.mxu1 %vm446_vm6, %v366_v61  ;;  %s775_s9 = scalar_lea.vmem %s774_s8, 32  ;;  %p776_p6 = scmp.lt.s32.totalorder %s1024_s7, %s774_s8 }
  0x43   : > { %p772_p0 = pneg %p771_p11  ;;  %p777_p13 = scmp.lt.s32.totalorder %s775_s9, %s769_s6 }
  0x44   : > { %667 = vmatpush3.bf16.msra.mxu0 %v666_v22 }
  0x45   : > { %298 = vmax.xlane.f32.xlu1 %v266_v12  ;;  %p778_p2 = por %p777_p13, %p776_p6 }
  0x46   : > { %296 = vmax.xlane.f32.xlu0 %v265_v13 }
  0x47   : > { %p779_p5 = pnand %p778_p2, %p772_p0 }
  0x49   : > { %302 = vmax.xlane.f32.xlu1 %v268_v14 }
  0x4a   : > { %300 = vmax.xlane.f32.xlu0 %v267_v15 }
  0xca   : > { %v285_v26 = vpop.xlane.xlu1 %284 }
  0xcb   : > { %v281_v29 = vpop.xlane.xlu0 %280  ;;  %v290_v39 = vmul.f32 0.00390625, %v285_v26 }
  0xcc   : > { %v288_v34 = vmul.f32 0.00390625, %v281_v29 }
  0xcd   : > { %v325_v49 = vrot.slane %v290_v39, %v324_v38 }
  0xce   : > { %v287_v31 = vpop.xlane.xlu1 %286  ;;  %v313_v42 = vrot.slane %v288_v34, %v312_v33 }
  0xcf   : > { %v283_v36 = vpop.xlane.xlu0 %282  ;;  %v291_v44 = vmul.f32 0.00390625, %v287_v31 }
  0xd0   : > { %v289_v37 = vmul.f32 0.00390625, %v283_v36 }
  0xd1   : > { %v332_v51 = vrot.slane %v291_v44, %v331_v43 }
  0xd2   : > { %v318_v40 = vrot.slane %v289_v37, %v317_v32  ;;  %v299_v41 = vpop.xlane.xlu1 %298 }
  0xd3   : > { %v297_v45 = vpop.xlane.xlu0 %296  ;;  %v347_v47 = vrot.slane %v299_v41, %v317_v32 }
  0xd4   : > { %v320_v46 = vsel %vm319_vm1, %v318_v40, %v313_v42  ;;  %v343_v48 = vrot.slane %v297_v45, %v312_v33 }
  0xd5   : > { %v327_v55 = vsel %vm326_vm2, %v325_v49, %v320_v46 }
  0xd6   : > { %v303_v50 = vpop.xlane.xlu1 %302  ;;  %v348_v56 = vsel %vm319_vm1, %v347_v47, %v343_v48  ;;  %v334_v59 = vsel %vm333_vm3, %v332_v51, %v327_v55 }
  0xd7   : > { %v301_v52 = vpop.xlane.xlu0 %300  ;;  %v357_v53 = vrot.slane %v303_v50, %v331_v43 }
  0xd8   : > { %v352_v54 = vrot.slane %v301_v52, %v324_v38 }
  0xda   : > { %v353_v57 = vsel %vm326_vm2, %v352_v54, %v348_v56 }
  0xdb   : > { %v358_v58 = vsel %vm333_vm3, %v357_v53, %v353_v57 }
  0xdc   : > { %v361_v60 = vsel %vm360_vm4, %v334_v59, %v358_v58 }
  0xdd   : > { %655 = vmatmul.mubr.msk.f32.vlgmr.msra.gmra.mrb[0].mxu0 %vm367_vm5, %v361_v60 }
 0x1b0   : > { %v437_v62 = vpop.f32.mrb[0].mxu0 }
 0x1b1   : > { %v441_v63 = vmax.f32 %v437_v62, 0.0  ;;  %v656_v0 = vpop.f32.mrb[1].mxu0 }
 0x1b3   : > { %660 = vmatmul.mubr.msk.f32.vlgmr.msra.gmra.mrb[0].mxu1 %vm442_vm7, %v441_v63 }
 0x286   : > { %v516_v1 = vpop.f32.mrb[0].mxu1 }
 0x287   : > { %v521_v2 = vrot.slane %v516_v1, 1  ;;  %v661_v3 = vpop.f32.mrb[1].mxu1 }
 0x289   : > { %v523_v4 = vadd.f32 %v521_v2, %v516_v1 }
 0x28b   : > { %v634_v5 = vmul.f32 -1.442695, %v523_v4 }
 0x28d   : > { %735 = vpow2.f32 %v634_v5 }
 0x297   : > { %v736_v6 = vpop.eup %735 }
 0x298   : > { %v527_v7 = vadd.f32 1.0, %v736_v6 }
 0x29a   : > { %737 = vrcp.f32 %v527_v7 }
 0x2a4   : > { %v738_v8 = vpop.eup %737 }
 0x2a5   : > { %531 = vst.msk [vmem:[%s203_s5] sm:$0x1] %vm530_vm8, %v738_v8 }
 0x2a6   : > { %782 = shalt.err (!%p779_p5)
}
 0x2a7   : > { %s783_s11 = scalar_lea.hbm %s1022_s21, 16  ;;  %s787_s23 = scalar_lea.hbm %s1074_s3, 32 }
 0x2a8   : > { %p784_p4 = scmp.ne.s32.totalorder %s1022_s21, %s783_s11  ;;  %p788_p12 = scmp.lt.u32.totalorder %s1022_s21, %s1074_s3 }
 0x2a9   : > { %p789_p1 = scmp.lt.u32.totalorder %s787_s23, %s783_s11  ;;  %p791_p8 = scmp.lt.u32.totalorder %s783_s11, %s1022_s21 }
 0x2aa   : > { %p785_p7 = pnand %p784_p4, %p1082_p9 }
 0x2ab   : > { %p790_p3 = por %p789_p1, %p788_p12 }
 0x2ac   : > { %p786_p10 = pneg %p785_p7 }
 0x2ad   : > { %p792_p11 = por %p791_p8, %p790_p3 }
 0x2af   : > { %p793_p0 = pnand %p792_p11, %p786_p10 }
 0x2b1   : > { %796 = shalt.err (!%p793_p0)
}
 0x2b2   : > { %670 = dma.vmem_to_hbm [thread:$0]  (%p1082_p9), %s1024_s7, 16, %s1022_s21, %s533_s24  }
 0x2b3 PF: > { %s557_s30 = sand.u32 1, %s831_s12   ;;  %p1083_p6 = scmp.ne.s32.totalorder %s1079_s27, 0 }
 0x2b4   : > { %p1084_p13 = scmp.ge.s32.totalorder %s851_s17, 2  ;;  %s558_s4 = scalar_lea.sflag [#allocation6], %s557_s30 }
 0x2b6   : > { %p677_p2 = pnand %p1084_p13, %p1083_p6 }
 0x2b8   : > { %826 = dma.done.wait (!%p677_p2), %s558_s4, 16  }
 0x2b9   : > { %828 = vsyncadd (!%p677_p2), %s558_s4, 4294967280  ;;  %s19_s17 = sadd.s32 1, %s851_s17   ;;  %s1085_s12 = smov %s835_s13 }
 0x2ba   : > { %p16_p5 = scmp.ge.s32.totalorder %s19_s17, 4   ;;  %s1086_s13 = smov %s839_s14 }
 0x2bb   : > { %s1087_s14 = smov %s936_s26  ;;  %s1088_s15 = smov %s847_s16 }
 0x2bc   : > { %s1089_s16 = smov %s1091_s20  ;;  %18 = sbr.rel (!%p16_p5) target bundleno = 6 (0x6), region = 85 }
 0x2c3   :  { %562 = vsyncpa [#allocation5], 1 }
 0x2c4   :  { %564 = vsyncpa [#allocation5 + $0x1], 1 }
 0x2c5   :  { %565 = vsyncpa [#allocation6], 1 }
 0x2c6   :  { %567 = vsyncpa [#allocation6 + $0x1], 1 }

</bundles_post_ra>
